<compile_context>
chip_gen: v6e
topology: v6e:2x2x1
jax: 0.10.0
libtpu: 0.0.40
codegen_flags: <defaults>
</compile_context>

<pallas_src>
from typing import NamedTuple

import jax
import jax.numpy as jnp
from jax.experimental import pallas as pl
from jax.experimental.pallas import tpu as pltpu


class Bernoulli(NamedTuple):
    """Minimal stand-in for torch.distributions.Bernoulli(logits=...)."""
    logits: jnp.ndarray
    probs: jnp.ndarray


class CategoricalParams(NamedTuple):
    """Kernel-ready parameters (prepared ONCE, reused every forward call)."""
    w_t: jnp.ndarray      # (k_w, n_w) compute dtype, pre-transposed & padded
    bias: jnp.ndarray     # (1,  n_w) float32, padded
    in_features: int
    out_features: int


def _round_up(x: int, m: int) -> int:
    return ((x + m - 1) // m) * m


def _pad_dim(d: int, mult: int = 128) -> int:
    # Pad a lane/reduction dim to a multiple of `mult` only once it is at least
    # one full tile wide; smaller dims are left untouched (full-array blocks are
    # always legal, and padding e.g. a 16-wide output to 128 just multiplies
    # HBM writeback bytes for no benefit).
    return d if d < mult else _round_up(d, mult)


def _vmem_budget():
    """(tile budget bytes, vmem_limit_bytes) with headroom for any TPU gen."""
    try:
        cap = int(pltpu.get_tpu_info().vmem_capacity_bytes)
    except Exception:
        cap = 64 * 1024 * 1024            # conservative: v7x per-TensorCore VMEM
    budget = min(int(cap * 0.6), 48 * 1024 * 1024)
    limit = int(max(32 * 1024 * 1024, min(cap - 8 * 1024 * 1024, int(budget * 1.3))))
    return budget, limit


def prepare_params(weight, bias, compute_dtype=jnp.bfloat16) -> CategoricalParams:
    """One-time transpose / pad / cast of the Linear parameters.

    weight: (out_features, in_features)  (PyTorch nn.Linear layout)
    bias:   (out_features,)
    compute_dtype: MXU operand dtype (bf16 default; accumulation stays f32).
    """
    out_features, in_features = weight.shape
    k_w = _pad_dim(in_features)
    n_w = _pad_dim(out_features)
    w_t = jnp.pad(weight.T.astype(compute_dtype),
                  ((0, k_w - in_features), (0, n_w - out_features)))
    b_p = jnp.pad(bias.astype(jnp.float32),
                  (0, n_w - out_features)).reshape(1, n_w)
    return CategoricalParams(w_t=w_t, bias=b_p,
                             in_features=in_features, out_features=out_features)


# --------------------------------------------------------------------------- #
# Kernels
# --------------------------------------------------------------------------- #

def _fused_kernel(x_ref, w_ref, b_ref, logits_ref, probs_ref):
    # x_ref: (tm, K)   w_ref: (K, N) resident   b_ref: (1, N)
    acc = jnp.dot(x_ref[...], w_ref[...], preferred_element_type=jnp.float32)
    logits = acc + b_ref[...]
    logits_ref[...] = logits.astype(logits_ref.dtype)
    # Bernoulli probs = sigmoid(logits); transcendental goes to the EUP slot.
    probs_ref[...] = jax.nn.sigmoid(logits).astype(probs_ref.dtype)


def _tiled_kernel(x_ref, w_ref, b_ref, logits_ref, probs_ref, acc_ref):
    # Fallback for layers whose weight does not fit VMEM.
    k = pl.program_id(2)

    @pl.when(k == 0)
    def _init():
        acc_ref[...] = jnp.zeros_like(acc_ref)

    acc_ref[...] += jnp.dot(x_ref[...], w_ref[...],
                            preferred_element_type=jnp.float32)

    @pl.when(k == pl.num_programs(2) - 1)
    def _finalize():
        logits = acc_ref[...] + b_ref[...]
        logits_ref[...] = logits.astype(logits_ref.dtype)
        probs_ref[...] = jax.nn.sigmoid(logits).astype(probs_ref.dtype)


# --------------------------------------------------------------------------- #
# Forward
# --------------------------------------------------------------------------- #

def categorical_forward(x, params: CategoricalParams, *,
                        out_dtype=jnp.float32, probs_dtype=jnp.float32):
    """Pallas implementation of Categorical.forward.

    x: (batch, in_features).  Returns Bernoulli(logits, probs), each
    (batch, out_features).  On HBM-BW-starved chips (v5e) probs_dtype can be
    set to bf16 to cut output writeback.
    """
    batch, in_features = x.shape
    assert in_features == params.in_features
    k_w, n_w = params.w_t.shape
    cd = params.w_t.dtype
    cb = jnp.dtype(cd).itemsize
    ob = jnp.dtype(out_dtype).itemsize + jnp.dtype(probs_dtype).itemsize

    budget, vmem_limit = _vmem_budget()

    m_pad = _round_up(batch, 8)
    x_p = x.astype(cd)
    if m_pad != batch or k_w != in_features:
        x_p = jnp.pad(x_p, ((0, m_pad - batch), (0, k_w - in_features)))

    out_shape = (jax.ShapeDtypeStruct((m_pad, n_w), out_dtype),    # logits
                 jax.ShapeDtypeStruct((m_pad, n_w), probs_dtype))  # probs

    # ---------------- fused, resident-weight path ---------------- #
    w_bytes = 2 * k_w * n_w * cb + 2 * n_w * 4       # W^T + bias (2x headroom)

    def fused_footprint(tm_):
        return w_bytes + 2 * tm_ * k_w * cb + 2 * tm_ * n_w * ob

    tm = None
    if fused_footprint(8) <= budget:
        cands = [d for d in range(8, min(m_pad, 512) + 1, 8)
                 if m_pad % d == 0 and fused_footprint(d) <= budget]
        if cands:
            multi = [d for d in cands if m_pad // d >= 2]   # v7x: >=2 parallel steps
            tm = max(multi) if multi else max(cands)

    if tm is not None:
        logits_p, probs_p = pl.pallas_call(
            _fused_kernel,
            out_shape=out_shape,
            grid_spec=pltpu.PrefetchScalarGridSpec(
                num_scalar_prefetch=0,
                grid=(m_pad // tm,),
                in_specs=[
                    pl.BlockSpec((tm, k_w), lambda i: (i, 0)),    # x tile
                    pl.BlockSpec((k_w, n_w), lambda i: (0, 0)),   # W^T, resident
                    pl.BlockSpec((1, n_w), lambda i: (0, 0)),     # bias, resident
                ],
                out_specs=(
                    pl.BlockSpec((tm, n_w), lambda i: (i, 0)),
                    pl.BlockSpec((tm, n_w), lambda i: (i, 0)),
                ),
            ),
            compiler_params=pltpu.CompilerParams(
                dimension_semantics=("parallel",),
                vmem_limit_bytes=vmem_limit,
            ),
        )(x_p, params.w_t, params.bias)
    else:
        # ---------------- tiled fallback (large K*N) ---------------- #
        def footprint(tm_, tn_, tk_):
            return (2 * tm_ * tk_ * cb + 2 * tk_ * tn_ * cb + 2 * tn_ * 4
                    + 2 * tm_ * tn_ * ob + tm_ * tn_ * 4)

        def divisors(total, cands):
            return sorted({c for c in cands if 0 < c <= total and total % c == 0})

        tk_cands = divisors(k_w, (128, 256, 512, 1024, 2048, k_w))
        tn_cands = divisors(n_w, (128, 256, 512, 1024, n_w))
        tm_list = [8, 16, 32, 64, 128, 256, 512]
        if m_pad <= 512:
            tm_list.append(m_pad)
        tm_cands = divisors(m_pad, tm_list)

        tn_min = min(tn_cands)
        # Greedy: maximize tk (amortizes per-step overhead + accumulator RMW),
        # then tm (cuts W HBM re-fetch, which scales with m_pad/tm), then tn.
        fits = [c for c in tk_cands if footprint(8, tn_min, c) <= budget]
        tk = max(fits) if fits else min(tk_cands)
        fits = [c for c in tm_cands if footprint(c, tn_min, tk) <= budget]
        tmt = max(fits) if fits else min(tm_cands)
        fits = [c for c in tn_cands if footprint(tmt, c, tk) <= budget]
        tn = max(fits) if fits else tn_min

        logits_p, probs_p = pl.pallas_call(
            _tiled_kernel,
            out_shape=out_shape,
            grid_spec=pltpu.PrefetchScalarGridSpec(
                num_scalar_prefetch=0,
                grid=(m_pad // tmt, n_w // tn, k_w // tk),
                in_specs=[
                    pl.BlockSpec((tmt, tk), lambda i, j, k: (i, k)),
                    pl.BlockSpec((tk, tn), lambda i, j, k: (k, j)),
                    pl.BlockSpec((1, tn), lambda i, j, k: (0, j)),
                ],
                out_specs=(
                    pl.BlockSpec((tmt, tn), lambda i, j, k: (i, j)),
                    pl.BlockSpec((tmt, tn), lambda i, j, k: (i, j)),
                ),
                scratch_shapes=[pltpu.VMEM((tmt, tn), jnp.float32)],
            ),
            compiler_params=pltpu.CompilerParams(
                dimension_semantics=("parallel", "parallel", "arbitrary"),
                vmem_limit_bytes=vmem_limit,
            ),
        )(x_p, params.w_t, params.bias)

    logits = logits_p[:batch, :params.out_features]
    probs = probs_p[:batch, :params.out_features]
    return Bernoulli(logits=logits, probs=probs)


# --------------------------------------------------------------------------- #
# Demo / correctness check
# --------------------------------------------------------------------------- #

if __name__ == "__main__":
    key = jax.random.PRNGKey(0)

    def make_layer(k, in_features, out_features):
        kw, kb = jax.random.split(k)
        bound = 1.0 / jnp.sqrt(jnp.float32(in_features))
        weight = jax.random.uniform(kw, (out_features, in_features),
                                    jnp.float32, -bound, bound)
        bias = jax.random.uniform(kb, (out_features,), jnp.float32, -bound, bound)
        return weight, bias

    # --- tiny config (module's intended scale): unpadded single-block path ---
    batch, in_features, out_features = 8, 32, 16
    k0, k1, k2 = jax.random.split(key, 3)
    weight, bias = make_layer(k0, in_features, out_features)
    x = jax.random.normal(k1, (batch, in_features), jnp.float32)

    ref_logits = x @ weight.T + bias
    ref_probs = jax.nn.sigmoid(ref_logits)

    # f32 MXU operands -> tight check.
    params_f32 = prepare_params(weight, bias, compute_dtype=jnp.float32)
    dist_f32 = jax.jit(lambda a: categorical_forward(a, params_f32))(x)
    jax.block_until_ready(dist_f32.logits)
    jax.block_until_ready(dist_f32.probs)
    assert jnp.allclose(dist_f32.logits, ref_logits, atol=1e-5, rtol=1e-5)
    assert jnp.allclose(dist_f32.probs, ref_probs, atol=1e-5, rtol=1e-5)

    # bf16 MXU operands (default, f32 accumulation) -> loose check.
    params_bf16 = prepare_params(weight, bias)
    dist_bf16 = jax.jit(lambda a: categorical_forward(a, params_bf16))(x)
    jax.block_until_ready(dist_bf16.logits)
    assert jnp.allclose(dist_bf16.logits, ref_logits, atol=5e-2, rtol=5e-2)
    assert jnp.allclose(dist_bf16.probs, ref_probs, atol=5e-2, rtol=5e-2)

    # --- medium config: exercises N padding + multi-block (parallel) batch axis ---
    batch2, in2, out2 = 48, 256, 200
    k3, k4 = jax.random.split(k2)
    w2, b2 = make_layer(k3, in2, out2)
    x2 = jax.random.normal(k4, (batch2, in2), jnp.float32)
    params2 = prepare_params(w2, b2)                       # bf16 operands
    dist2 = jax.jit(lambda a: categorical_forward(a, params2))(x2)
    jax.block_until_ready(dist2.logits)
    ref2 = x2 @ w2.T + b2
    assert dist2.logits.shape == (batch2, out2)
    assert jnp.allclose(dist2.logits, ref2, atol=5e-2, rtol=5e-2)
    assert jnp.allclose(dist2.probs, jax.nn.sigmoid(ref2), atol=5e-2, rtol=5e-2)

    print("KERNEL_OK")
</pallas_src>

<mosaic_0001>
module attributes {stable_mosaic.version = 11 : i64} {
  func.func @_fused_kernel(%arg0: i32, %arg1: memref<8x32xf32, #tpu.memory_space<vmem>>, %arg2: memref<32x16xf32, #tpu.memory_space<vmem>>, %arg3: memref<1x16xf32, #tpu.memory_space<vmem>>, %arg4: memref<8x16xf32, #tpu.memory_space<vmem>>, %arg5: memref<8x16xf32, #tpu.memory_space<vmem>>) attributes {dimension_semantics = [#tpu.dimension_semantics<parallel>], iteration_bounds = array<i64: 1>, scalar_prefetch = 0 : i64, scratch_operands = 0 : i64, tpu.core_type = #tpu.core_type<tc>, window_params = [{transform_indices = @transform_0, window_bounds = array<i64: 8, 32>}, {pipeline_mode = #tpu.pipeline_mode<synchronous>, transform_indices = @transform_1, window_bounds = array<i64: 32, 16>}, {pipeline_mode = #tpu.pipeline_mode<synchronous>, transform_indices = @transform_2, window_bounds = array<i64: 1, 16>}, {transform_indices = @transform_3, window_bounds = array<i64: 8, 16>}, {transform_indices = @transform_4, window_bounds = array<i64: 8, 16>}]} {
    %c0 = arith.constant 0 : index
    %c0_0 = arith.constant 0 : index
    %0 = vector.load %arg1[%c0, %c0_0] : memref<8x32xf32, #tpu.memory_space<vmem>>, vector<8x32xf32>
    %c0_1 = arith.constant 0 : index
    %c0_2 = arith.constant 0 : index
    %1 = vector.load %arg2[%c0_1, %c0_2] : memref<32x16xf32, #tpu.memory_space<vmem>>, vector<32x16xf32>
    %cst = arith.constant dense<0.000000e+00> : vector<8x16xf32>
    %2 = tpu.matmul %0, %1, %cst {dimension_numbers = #tpu.dot_dimension_numbers<[1], [0], [0], [1], [0, 0, 1, 1], [], []>} : vector<8x32xf32>, vector<32x16xf32>, vector<8x16xf32> -> vector<8x16xf32>
    %c0_3 = arith.constant 0 : index
    %c0_4 = arith.constant 0 : index
    %3 = vector.load %arg3[%c0_3, %c0_4] : memref<1x16xf32, #tpu.memory_space<vmem>>, vector<1x16xf32>
    %4 = vector.broadcast %3 : vector<1x16xf32> to vector<8x16xf32>
    %5 = arith.addf %2, %4 : vector<8x16xf32>
    %c0_5 = arith.constant 0 : index
    %c0_6 = arith.constant 0 : index
    %6 = vector.load %arg4[%c0_5, %c0_6] : memref<8x16xf32, #tpu.memory_space<vmem>>, vector<8x16xf32>
    tpu.vector_store %arg4[%c0_5, %c0_6], %5 {strides = array<i32>} : memref<8x16xf32, #tpu.memory_space<vmem>>, vector<8x16xf32>,
    %7 = arith.negf %5 : vector<8x16xf32>
    %8 = math.exp %7 : vector<8x16xf32>
    %cst_7 = arith.constant 1.000000e+00 : f32
    %9 = vector.broadcast %cst_7 : f32 to vector<8x16xf32>
    %10 = arith.addf %9, %8 : vector<8x16xf32>
    %11 = arith.divf %9, %10 : vector<8x16xf32>
    %c0_8 = arith.constant 0 : index
    %c0_9 = arith.constant 0 : index
    %12 = vector.load %arg5[%c0_8, %c0_9] : memref<8x16xf32, #tpu.memory_space<vmem>>, vector<8x16xf32>
    tpu.vector_store %arg5[%c0_8, %c0_9], %11 {strides = array<i32>} : memref<8x16xf32, #tpu.memory_space<vmem>>, vector<8x16xf32>,
    return
  }
  func.func @transform_0(%arg0: i32) -> (i32, i32) {
    %c0_i32 = arith.constant 0 : i32
    %c0_i32_0 = arith.constant 0 : i32
    return %arg0, %c0_i32 : i32, i32
  }
  func.func @transform_1(%arg0: i32) -> (i32, i32) {
    %c0_i32 = arith.constant 0 : i32
    %c0_i32_0 = arith.constant 0 : i32
    %c0_i32_1 = arith.constant 0 : i32
    return %c0_i32, %c0_i32_0 : i32, i32
  }
  func.func @transform_2(%arg0: i32) -> (i32, i32) {
    %c0_i32 = arith.constant 0 : i32
    %c0_i32_0 = arith.constant 0 : i32
    %c0_i32_1 = arith.constant 0 : i32
    return %c0_i32, %c0_i32_0 : i32, i32
  }
  func.func @transform_3(%arg0: i32) -> (i32, i32) {
    %c0_i32 = arith.constant 0 : i32
    %c0_i32_0 = arith.constant 0 : i32
    return %arg0, %c0_i32 : i32, i32
  }
  func.func @transform_4(%arg0: i32) -> (i32, i32) {
    %c0_i32 = arith.constant 0 : i32
    %c0_i32_0 = arith.constant 0 : i32
    return %arg0, %c0_i32 : i32, i32
  }
}

</mosaic_0001>

<bundles_post_ra>
// kernel: _lambda_.1
= control target key start
LH: loop header
LB: loop body
LE: loop exit
PB: predicated region body
PF: predicated region fallthrough
CT: control target
= control target key end

     0   :  { %10 = vsyncpa [#allocation3], 0  ;;  %s338_s0 = inlined_call_operand.hbm [shape: f32[8,32], index: 0, kind: input, shape index: {}]   ;;  %s339_s1 = inlined_call_operand.hbm [shape: f32[32,16], index: 1, kind: input, shape index: {}]   ;;  %s340_s2 = inlined_call_operand.vmem [shape: f32[1,16], index: 2, kind: input, shape index: {}]   ;;  %s341_s3 = inlined_call_operand.hbm [shape: f32[8,16], index: 3, kind: output, shape index: {0}]   ;;  %s342_s4 = inlined_call_operand.hbm [shape: f32[8,16], index: 4, kind: output, shape index: {1}]  }
   0x1   :  { %11 = vsyncpa [#allocation6], 0 }
   0x2   :  { %12 = vsyncpa [#allocation4], 0 }
   0x3   :  { %13 = vsyncpa [#allocation9], 0  ;;  %s288_s15 = smov [#allocation2]   ;;  %s289_s17 = smov [#allocation5]  }
   0x4   :  { %s20_s16 = sshll.u32 %s288_s15, 4  ;;  %s29_s18 = sshll.u32 %s289_s17, 4  ;;  %s21_s16 = int_to_ptr.vmem [resolvable:$true] %s20_s16  ;;  %s30_s18 = int_to_ptr.vmem [resolvable:$true] %s29_s18 }
   0x5   :  { %s208_s19 = scalar_lea.vmem %s21_s16, 128  ;;  %p213_p1 = scmp.lt.s32.totalorder %s21_s16, %s21_s16 }
   0x6   :  { %p209_p0 = scmp.ne.s32.totalorder %s21_s16, %s208_s19  ;;  %p214_p2 = scmp.lt.s32.totalorder %s208_s19, %s208_s19 }
   0x8   :  { %p215_p3 = por %p214_p2, %p213_p1 }
   0xa   :  { %p216_p4 = pnand %p215_p3, %p209_p0 }
   0xc   :  { %219 = shalt.err (!%p216_p4)
}
   0xd   :  { %23 = dma.hbm_to_vmem [thread:$0]  %s338_s0, 128, %s21_s16, [#allocation3]  }
   0xe   :  { %s228_s22 = scalar_lea.vmem %s30_s18, 512  ;;  %p233_p6 = scmp.lt.s32.totalorder %s30_s18, %s30_s18 }
   0xf   :  { %p229_p5 = scmp.ne.s32.totalorder %s30_s18, %s228_s22  ;;  %p234_p7 = scmp.lt.s32.totalorder %s228_s22, %s228_s22 }
  0x11   :  { %p235_p8 = por %p234_p7, %p233_p6 }
  0x13   :  { %p236_p9 = pnand %p235_p8, %p229_p5 }
  0x15   :  { %239 = shalt.err (!%p236_p9)
}
  0x16   :  { %s290_s23 = smov 128   ;;  %s291_s24 = smov 8  }
  0x17   :  { %35 = dma.hbm_to_vmem [thread:$0]  %s339_s1, 512, %s30_s18, [#allocation6], %s290_s23, %s290_s23, %s291_s24  }
  0x18   :  { %280 = dma.done.wait [#allocation3], 128  }
  0x19   :  { %281 = vsyncadd [#allocation3], 4294967168 }
  0x1a   :  { %282 = dma.done.wait [#allocation6], 512  }
  0x1b   :  { %283 = vsyncadd [#allocation6], 4294966784  ;;  %v292_v0 = vmov 0.0   ;;  %vm293_vm0 = vmmov 0   ;;  %v48_v1 = vld [vmem:[#allocation5 + $0x18] sm:$0xff]  ;;  %v47_v2 = vld [vmem:[#allocation5 + $0x10] sm:$0xff] }
  0x1c   :  { %177 = vmatprep.subr.mxu0 %v292_v0  ;;  %185 = vmatprep.mubr.msk.f32.mxu0 %vm293_vm0, %v292_v0  ;;  %v46_v3 = vld [vmem:[#allocation5 + $0x8] sm:$0xff]  ;;  %v45_v4 = vld [vmem:[#allocation5] sm:$0xff]  ;;  %v44_v5 = vld [vmem:[#allocation2] sm:$0xff]  ;;  %vm56_vm1 = vcmask 261120   ;;  %s294_s27 = smov [#allocation7]   ;;  %vm130_vm2 = vcmask 130048  }
  0x1d   :  { %178 = vmatpush3.msra.mxu0 %v48_v1  ;;  %v169_v6 = vld [vmem:[%s340_s2] ss:$0 sm:$0xff]  ;;  %s145_s28 = sshll.u32 %s294_s27, 4  ;;  %s146_s28 = int_to_ptr.vmem [resolvable:$true] %s145_s28 }
  0x1e   :  { %179 = vmatprep.subr.mxu0 %v292_v0  ;;  %s240_s29 = scalar_lea.vmem %s146_s28, 128  ;;  %p245_p11 = scmp.lt.s32.totalorder %s146_s28, %s146_s28 }
  0x1f   :  { %180 = vmatpush3.msra.mxu0 %v47_v2  ;;  %p241_p10 = scmp.ne.s32.totalorder %s146_s28, %s240_s29  ;;  %p246_p12 = scmp.lt.s32.totalorder %s240_s29, %s240_s29 }
  0x20   :  { %181 = vmatprep.subr.mxu0 %v292_v0 }
  0x21   :  { %182 = vmatpush3.msra.mxu0 %v46_v3  ;;  %p247_p13 = por %p246_p12, %p245_p11 }
  0x22   :  { %183 = vmatprep.subr.mxu0 %v292_v0 }
  0x23   :  { %184 = vmatpush3.msra.mxu0 %v45_v4  ;;  %p248_p0 = pnand %p247_p13, %p241_p10 }
  0x24   :  { %186 = vmatmul.mubr.msk.f32.vlgmr.msra.gmra.mxu0 %vm56_vm1, %v44_v5 }
  0xe4   :  { %v126_v7 = vpop.f32.mrf.mxu0 }
  0xe5   :  { %v127_v8 = vadd.f32 %v169_v6, %v126_v7 }
  0xe6   :  { %v187_v9 = vpop.f32.mrf.mxu0 }
  0xe7   :  { %v171_v10 = vmul.f32 -1.442695, %v127_v8  ;;  %131 = vst.msk [vmem:[#allocation7] sm:$0xff] %vm130_vm2, %v127_v8 }
  0xe8   :  { %251 = shalt.err (!%p248_p0)
}
  0xe9   :  { %148 = dma.vmem_to_hbm [thread:$0]  %s146_s28, 128, %s341_s3, [#allocation4]   ;;  %196 = vpow2.f32 %v171_v10 }
  0xea   :  { %s295_s2 = smov [#allocation8]  }
  0xeb   :  { %s155_s6 = sshll.u32 %s295_s2, 4  ;;  %s156_s6 = int_to_ptr.vmem [resolvable:$true] %s155_s6 }
  0xec   :  { %s260_s7 = scalar_lea.vmem %s156_s6, 128  ;;  %p265_p2 = scmp.lt.s32.totalorder %s156_s6, %s156_s6 }
  0xed   :  { %p261_p1 = scmp.ne.s32.totalorder %s156_s6, %s260_s7  ;;  %p266_p3 = scmp.lt.s32.totalorder %s260_s7, %s260_s7 }
  0xef   :  { %p267_p4 = por %p266_p3, %p265_p2 }
  0xf1   :  { %p268_p5 = pnand %p267_p4, %p261_p1 }
  0xf6   :  { %v197_v11 = vpop.eup %196 }
  0xf7   :  { %v135_v12 = vadd.f32 1.0, %v197_v11 }
  0xf9   :  { %198 = vrcp.f32 %v135_v12 }
 0x106   :  { %v199_v13 = vpop.eup %198 }
 0x107   :  { %138 = vst.msk [vmem:[#allocation8] sm:$0xff] %vm130_vm2, %v199_v13 }
 0x108   :  { %271 = shalt.err (!%p268_p5)
}
 0x109   :  { %158 = dma.vmem_to_hbm [thread:$0]  %s156_s6, 128, %s342_s4, [#allocation9]  }
 0x10a   :  { %284 = dma.done.wait [#allocation4], 128  }
 0x10b   :  { %285 = vsyncadd [#allocation4], 4294967168 }
 0x10c   :  { %286 = dma.done.wait [#allocation9], 128  }
 0x10d   :  { %287 = vsyncadd [#allocation9], 4294967168 }
 0x10e   :  { %165 = vsyncpa [#allocation3], 1 }
 0x10f   :  { %166 = vsyncpa [#allocation6], 1 }
 0x110   :  { %167 = vsyncpa [#allocation4], 1 }
 0x111   :  { %168 = vsyncpa [#allocation9], 1 }

</bundles_post_ra>
